<compile_context>
chip_gen: v7x
topology: tpu7x:2x2x1
jax: 0.10.0
libtpu: 0.0.40
codegen_flags: <defaults>
</compile_context>

<pallas_src>
import functools
import math

import jax
import jax.numpy as jnp
from jax import lax
from jax.experimental import pallas as pl
from jax.experimental.pallas import tpu as pltpu

_LANE = 128  # TPU lane width / MXU tile (same on v5e/v6e/v7x)


def _round_up(n, m):
    return (n + m - 1) // m * m


def _actor_kernel(x_ref, w1_ref, b1_ref, w2_ref, b2_ref, out_ref,
                  *, num_actions, mxu_dtype, approx_recip):
    # ---- fc1 + ReLU (MXU matmul, f32 accumulation; bias/ReLU in f32) ----
    x = x_ref[...]                                                   # (TB, in)
    h = jnp.dot(x.astype(mxu_dtype), w1_ref[...].astype(mxu_dtype),
                preferred_element_type=jnp.float32) + b1_ref[...]    # (TB, 128)
    h = jnp.maximum(h, 0.0)

    # ---- fc2 ----
    logits = jnp.dot(h.astype(mxu_dtype), w2_ref[...].astype(mxu_dtype),
                     preferred_element_type=jnp.float32) + b2_ref[...]  # (TB, AP)

    # ---- masked, numerically-stable softmax over the real actions ----
    col = lax.broadcasted_iota(jnp.int32, logits.shape, dimension=1)
    valid = col < num_actions
    logits = jnp.where(valid, logits, jnp.float32(-1e30))
    m = jnp.max(logits, axis=-1, keepdims=True)
    e = jnp.where(valid, jnp.exp(logits - m), 0.0)
    denom = jnp.sum(e, axis=-1, keepdims=True)
    inv = pl.reciprocal(denom, approx=approx_recip)   # EUP slot, frees the VPU
    out_ref[...] = (e * inv).astype(out_ref.dtype)


def actor_forward(x, w1, b1, w2, b2, *, block_batch=512,
                  mxu_dtype=jnp.float32, approx_recip=False):
    """x: (B, input_size) f32 -> (B, num_actions) f32 action probabilities.

    w1: (input_size, hidden), b1: (1, hidden), w2: (hidden, num_actions),
    b2: (1, num_actions)  (i.e. PyTorch weights transposed).
    Set mxu_dtype=jnp.bfloat16 on v6e/v7x for MXU-peak matmuls; keep f32 on v5e.
    """
    B, input_size = x.shape
    hidden = w1.shape[1]
    num_actions = w2.shape[1]

    # Pad hidden and actions up to the 128-lane MXU/vreg tile (zero columns /
    # rows contribute nothing; padded actions are masked inside the kernel).
    hidden_p = _round_up(hidden, _LANE)
    act_p = _round_up(num_actions, _LANE)
    w1p = jnp.pad(w1, ((0, 0), (0, hidden_p - hidden)))
    b1p = jnp.pad(b1, ((0, 0), (0, hidden_p - hidden)))
    w2p = jnp.pad(w2, ((0, hidden_p - hidden), (0, act_p - num_actions)))
    b2p = jnp.pad(b2, ((0, 0), (0, act_p - num_actions)))

    # Batch tiling: TB multiple of 8, padded batch a multiple of TB.
    block_batch = max(8, _round_up(block_batch, 8))
    tb = min(block_batch, _round_up(B, 8))
    b_p = _round_up(B, tb)
    xp = jnp.pad(x, ((0, b_p - B), (0, 0)))

    grid = (b_p // tb,)
    kernel = functools.partial(_actor_kernel, num_actions=num_actions,
                               mxu_dtype=mxu_dtype, approx_recip=approx_recip)

    out_p = pl.pallas_call(
        kernel,
        out_shape=jax.ShapeDtypeStruct((b_p, act_p), jnp.float32),
        grid_spec=pltpu.PrefetchScalarGridSpec(
            num_scalar_prefetch=0,
            grid=grid,
            in_specs=[
                pl.BlockSpec((tb, input_size), lambda i: (i, 0)),   # x tile
                pl.BlockSpec((input_size, hidden_p), lambda i: (0, 0)),  # w1 (resident)
                pl.BlockSpec((1, hidden_p), lambda i: (0, 0)),      # b1 (resident)
                pl.BlockSpec((hidden_p, act_p), lambda i: (0, 0)),  # w2 (resident)
                pl.BlockSpec((1, act_p), lambda i: (0, 0)),         # b2 (resident)
            ],
            out_specs=pl.BlockSpec((tb, act_p), lambda i: (i, 0)),
        ),
        compiler_params=pltpu.CompilerParams(
            dimension_semantics=("parallel",)),
    )(xp, w1p, b1p, w2p, b2p)

    return out_p[:B, :num_actions]


def init_actor_params(key, input_size, num_actions, hidden=64):
    """Deterministic init mimicking PyTorch nn.Linear defaults:
    U(-1/sqrt(fan_in), 1/sqrt(fan_in)) for weights and biases."""
    k1, k2, k3, k4 = jax.random.split(key, 4)
    bound1 = 1.0 / math.sqrt(input_size)
    bound2 = 1.0 / math.sqrt(hidden)
    # stored as (in_features, out_features) == transpose of PyTorch weight
    w1 = jax.random.uniform(k1, (input_size, hidden), jnp.float32, -bound1, bound1)
    b1 = jax.random.uniform(k2, (1, hidden), jnp.float32, -bound1, bound1)
    w2 = jax.random.uniform(k3, (hidden, num_actions), jnp.float32, -bound2, bound2)
    b2 = jax.random.uniform(k4, (1, num_actions), jnp.float32, -bound2, bound2)
    return w1, b1, w2, b2


if __name__ == "__main__":
    # CartPole-like shapes: observation dim 4, 2 actions, small batch of 8.
    batch, input_size, num_actions = 8, 4, 2

    key = jax.random.PRNGKey(0)
    kx, kp = jax.random.split(key)
    x = jax.random.normal(kx, (batch, input_size), jnp.float32)
    w1, b1, w2, b2 = init_actor_params(kp, input_size, num_actions)

    # f32 MXU path, exact softmax — matches the plain-JAX reference tightly.
    probs = jax.block_until_ready(actor_forward(x, w1, b1, w2, b2))
    ref = jax.nn.softmax(jnp.maximum(x @ w1 + b1, 0.0) @ w2 + b2, axis=-1)
    assert probs.shape == (batch, num_actions)
    assert jnp.allclose(probs, ref, atol=1e-5), "mismatch vs f32 reference"
    assert jnp.allclose(jnp.sum(probs, axis=-1), 1.0, atol=1e-5)

    # Larger batch: multiple grid steps, megacore-parallel batch axis,
    # bf16 MXU operands + EUP approximate reciprocal (v6e/v7x-style config).
    big_b = 1024
    xb = jax.random.normal(jax.random.PRNGKey(1), (big_b, input_size), jnp.float32)
    probs_b = jax.block_until_ready(
        actor_forward(xb, w1, b1, w2, b2, block_batch=256,
                      mxu_dtype=jnp.bfloat16, approx_recip=True))
    ref_b = jax.nn.softmax(jnp.maximum(xb @ w1 + b1, 0.0) @ w2 + b2, axis=-1)
    assert probs_b.shape == (big_b, num_actions)
    assert jnp.allclose(probs_b, ref_b, atol=3e-2), "mismatch vs reference (bf16 path)"
    assert jnp.allclose(jnp.sum(probs_b, axis=-1), 1.0, atol=1e-2)

    print("KERNEL_OK")
</pallas_src>

<mosaic_0001>
module attributes {stable_mosaic.version = 11 : i64} {
  func.func @_actor_kernel(%arg0: i32, %arg1: memref<8x4xf32, #tpu.memory_space<vmem>>, %arg2: memref<4x128xf32, #tpu.memory_space<vmem>>, %arg3: memref<1x128xf32, #tpu.memory_space<vmem>>, %arg4: memref<128x128xf32, #tpu.memory_space<vmem>>, %arg5: memref<1x128xf32, #tpu.memory_space<vmem>>, %arg6: memref<8x128xf32, #tpu.memory_space<vmem>>) attributes {dimension_semantics = [#tpu.dimension_semantics<parallel>], iteration_bounds = array<i64: 1>, scalar_prefetch = 0 : i64, scratch_operands = 0 : i64, tpu.core_type = #tpu.core_type<tc>, window_params = [{transform_indices = @transform_0, window_bounds = array<i64: 8, 4>}, {pipeline_mode = #tpu.pipeline_mode<synchronous>, transform_indices = @transform_1, window_bounds = array<i64: 4, 128>}, {pipeline_mode = #tpu.pipeline_mode<synchronous>, transform_indices = @transform_2, window_bounds = array<i64: 1, 128>}, {pipeline_mode = #tpu.pipeline_mode<synchronous>, transform_indices = @transform_3, window_bounds = array<i64: 128, 128>}, {pipeline_mode = #tpu.pipeline_mode<synchronous>, transform_indices = @transform_4, window_bounds = array<i64: 1, 128>}, {transform_indices = @transform_5, window_bounds = array<i64: 8, 128>}]} {
    %c0 = arith.constant 0 : index
    %c0_0 = arith.constant 0 : index
    %0 = vector.load %arg1[%c0, %c0_0] : memref<8x4xf32, #tpu.memory_space<vmem>>, vector<8x4xf32>
    %c0_1 = arith.constant 0 : index
    %c0_2 = arith.constant 0 : index
    %1 = vector.load %arg2[%c0_1, %c0_2] : memref<4x128xf32, #tpu.memory_space<vmem>>, vector<4x128xf32>
    %cst = arith.constant dense<0.000000e+00> : vector<8x128xf32>
    %2 = tpu.matmul %0, %1, %cst {dimension_numbers = #tpu.dot_dimension_numbers<[1], [0], [0], [1], [0, 0, 1, 1], [], []>} : vector<8x4xf32>, vector<4x128xf32>, vector<8x128xf32> -> vector<8x128xf32>
    %c0_3 = arith.constant 0 : index
    %c0_4 = arith.constant 0 : index
    %3 = vector.load %arg3[%c0_3, %c0_4] : memref<1x128xf32, #tpu.memory_space<vmem>>, vector<1x128xf32>
    %4 = vector.broadcast %3 : vector<1x128xf32> to vector<8x128xf32>
    %5 = arith.addf %2, %4 : vector<8x128xf32>
    %cst_5 = arith.constant 0.000000e+00 : f32
    %6 = vector.broadcast %cst_5 : f32 to vector<8x128xf32>
    %7 = arith.maximumf %5, %6 : vector<8x128xf32>
    %c0_6 = arith.constant 0 : index
    %c0_7 = arith.constant 0 : index
    %8 = vector.load %arg4[%c0_6, %c0_7] : memref<128x128xf32, #tpu.memory_space<vmem>>, vector<128x128xf32>
    %cst_8 = arith.constant dense<0.000000e+00> : vector<8x128xf32>
    %9 = tpu.matmul %7, %8, %cst_8 {dimension_numbers = #tpu.dot_dimension_numbers<[1], [0], [0], [1], [0, 0, 1, 1], [], []>} : vector<8x128xf32>, vector<128x128xf32>, vector<8x128xf32> -> vector<8x128xf32>
    %c0_9 = arith.constant 0 : index
    %c0_10 = arith.constant 0 : index
    %10 = vector.load %arg5[%c0_9, %c0_10] : memref<1x128xf32, #tpu.memory_space<vmem>>, vector<1x128xf32>
    %11 = vector.broadcast %10 : vector<1x128xf32> to vector<8x128xf32>
    %12 = arith.addf %9, %11 : vector<8x128xf32>
    %13 = tpu.iota {dimensions = array<i32: 1>} : vector<8x128xi32>
    %c2_i32 = arith.constant 2 : i32
    %14 = vector.broadcast %c2_i32 : i32 to vector<8x128xi32>
    %15 = arith.cmpi slt, %13, %14 : vector<8x128xi32>
    %cst_11 = arith.constant -1.000000e+30 : f32
    %16 = vector.broadcast %cst_11 : f32 to vector<8x128xf32>
    %17 = arith.select %15, %12, %16 : vector<8x128xi1>, vector<8x128xf32>
    %cst_12 = arith.constant dense<0xFF800000> : vector<8xf32>
    %18 = vector.multi_reduction <maximumf>, %17, %cst_12 [1] : vector<8x128xf32> to vector<8xf32>
    %19 = vector.shape_cast %18 : vector<8xf32> to vector<8x1xf32>
    %20 = vector.broadcast %19 : vector<8x1xf32> to vector<8x128xf32>
    %21 = arith.subf %17, %20 : vector<8x128xf32>
    %22 = math.exp %21 : vector<8x128xf32>
    %cst_13 = arith.constant 0.000000e+00 : f32
    %23 = vector.broadcast %cst_13 : f32 to vector<8x128xf32>
    %24 = arith.select %15, %22, %23 : vector<8x128xi1>, vector<8x128xf32>
    %cst_14 = arith.constant dense<0.000000e+00> : vector<8xf32>
    %25 = vector.multi_reduction <add>, %24, %cst_14 [1] : vector<8x128xf32> to vector<8xf32>
    %26 = vector.shape_cast %25 : vector<8xf32> to vector<8x1xf32>
    %27 = tpu.reciprocal %26 : vector<8x1xf32> -> vector<8x1xf32>
    %28 = vector.broadcast %27 : vector<8x1xf32> to vector<8x128xf32>
    %29 = arith.mulf %24, %28 : vector<8x128xf32>
    %c0_15 = arith.constant 0 : index
    %c0_16 = arith.constant 0 : index
    %30 = vector.load %arg6[%c0_15, %c0_16] : memref<8x128xf32, #tpu.memory_space<vmem>>, vector<8x128xf32>
    tpu.vector_store %arg6[%c0_15, %c0_16], %29 {strides = array<i32>} : memref<8x128xf32, #tpu.memory_space<vmem>>, vector<8x128xf32>,
    return
  }
  func.func @transform_0(%arg0: i32) -> (i32, i32) {
    %c0_i32 = arith.constant 0 : i32
    %c0_i32_0 = arith.constant 0 : i32
    return %arg0, %c0_i32 : i32, i32
  }
  func.func @transform_1(%arg0: i32) -> (i32, i32) {
    %c0_i32 = arith.constant 0 : i32
    %c0_i32_0 = arith.constant 0 : i32
    %c0_i32_1 = arith.constant 0 : i32
    return %c0_i32, %c0_i32_0 : i32, i32
  }
  func.func @transform_2(%arg0: i32) -> (i32, i32) {
    %c0_i32 = arith.constant 0 : i32
    %c0_i32_0 = arith.constant 0 : i32
    %c0_i32_1 = arith.constant 0 : i32
    return %c0_i32, %c0_i32_0 : i32, i32
  }
  func.func @transform_3(%arg0: i32) -> (i32, i32) {
    %c0_i32 = arith.constant 0 : i32
    %c0_i32_0 = arith.constant 0 : i32
    %c0_i32_1 = arith.constant 0 : i32
    return %c0_i32, %c0_i32_0 : i32, i32
  }
  func.func @transform_4(%arg0: i32) -> (i32, i32) {
    %c0_i32 = arith.constant 0 : i32
    %c0_i32_0 = arith.constant 0 : i32
    %c0_i32_1 = arith.constant 0 : i32
    return %c0_i32, %c0_i32_0 : i32, i32
  }
  func.func @transform_5(%arg0: i32) -> (i32, i32) {
    %c0_i32 = arith.constant 0 : i32
    %c0_i32_0 = arith.constant 0 : i32
    return %arg0, %c0_i32 : i32, i32
  }
}

</mosaic_0001>

<bundles_post_ra>
// kernel: tpu_custom_call.1
= control target key start
LH: loop header
LB: loop body
LE: loop exit
PB: predicated region body
PF: predicated region fallthrough
CT: control target
= control target key end

     0   :  { %10 = vsyncpa [#allocation3], 0  ;;  %s465_s0 = inlined_call_operand.vmem [shape: f32[8,4], index: 0, kind: input, shape index: {}]   ;;  %s466_s1 = inlined_call_operand.vmem [shape: f32[4,128], index: 1, kind: input, shape index: {}]   ;;  %s467_s2 = inlined_call_operand.vmem [shape: f32[1,128], index: 2, kind: input, shape index: {}]   ;;  %s468_s3 = inlined_call_operand.hbm [shape: f32[128,128], index: 3, kind: input, shape index: {}]   ;;  %s469_s4 = inlined_call_operand.vmem [shape: f32[1,128], index: 4, kind: input, shape index: {}]   ;;  %s470_s5 = inlined_call_operand.hbm [shape: f32[8,128], index: 5, kind: output, shape index: {}]  }
   0x1   :  { %11 = vsyncpa [#allocation4], 0  ;;  %s392_s18 = smov [#allocation2]   ;;  %s344_s22 = scalar_lea.hbm %s468_s3, 2048 }
   0x2   :  { %s23_s19 = sshll.u32 %s392_s18, 4  ;;  %p345_p0 = scmp.ne.s32.totalorder %s468_s3, %s344_s22  ;;  %s24_s19 = int_to_ptr.vmem [resolvable:$true] %s23_s19 }
   0x3   :  { %p348_p1 = scmp.lt.u32.totalorder %s344_s22, %s468_s3 }
   0x5   :  { %p350_p2 = pnand %p348_p1, %p345_p0 }
   0x7   :  { %353 = shalt.err (!%p350_p2)
}
   0x8   :  { %s354_s27 = scalar_lea.vmem %s24_s19, 2048  ;;  %p359_p4 = scmp.lt.s32.totalorder %s24_s19, %s24_s19 }
   0x9   :  { %p355_p3 = scmp.ne.s32.totalorder %s24_s19, %s354_s27  ;;  %p360_p5 = scmp.lt.s32.totalorder %s354_s27, %s354_s27 }
   0xb   :  { %p361_p6 = por %p360_p5, %p359_p4 }
   0xd   :  { %p362_p7 = pnand %p361_p6, %p355_p3 }
   0xf   :  { %365 = shalt.err (!%p362_p7)
}
  0x10   :  { %s393_s28 = smov 128   ;;  %s394_s29 = smov 8  }
  0x11   :  { %29 = dma.hbm_to_vmem [thread:$0]  %s468_s3, 2048, %s24_s19, [#allocation3], %s393_s28, %s393_s28, %s394_s29  }
  0x12   :  { %388 = dma.done.wait [#allocation3], 2048  }
  0x13   :  { %389 = vsyncadd [#allocation3], 4294965248  ;;  %v395_v0 = vmov 0.0   ;;  %vm396_vm0 = vmmov 0   ;;  %v397_v1 = vmov 0.0|0.0   ;;  %vm48_vm1 = vcmask 1043456  }
  0x14   :  { %269 = vmatprep.subr.mxu0 %v395_v0  ;;  %271 = vmatprep.mubr.msk.f32.mxu0 %vm396_vm0, %v395_v0  ;;  %vm44_vm2 = vcmask 31744   ;;  %v36_v2 = vld [vmem:[%s466_s1] sm:$0xf]  ;;  %v124_v5 = vld [vmem:[#allocation2 + $0x8] sm:$0xff]  ;;  %v125_v6 = vld [vmem:[#allocation2 + $0x10] sm:$0xff]  ;;  %v216_v33 = vlaneseq }
  0x15   :  { %309 = vmatprep.subr.bf16.mxu1 %v397_v1  ;;  %306 = vmatprep.mubr.msk.f32.mxu1 %vm396_vm0, %v395_v0  ;;  %v35_v3 = vld [vmem:[%s465_s0] sm:$0xff]  ;;  %v126_v7 = vld [vmem:[#allocation2 + $0x18] sm:$0xff]  ;;  %v128_v11 = vld [vmem:[#allocation2 + $0x28] sm:$0xff] }
  0x16   :  { %v123_v4 = vld [vmem:[#allocation2] sm:$0xff]  ;;  %270 = vmatpush3.msk.msra.mxu0 %vm48_vm1, %v36_v2  ;;  %v313_v9 = vpack.c.bf16 %v126_v7, %v125_v6  ;;  %v129_v13 = vld [vmem:[#allocation2 + $0x30] sm:$0xff]  ;;  %v130_v14 = vld [vmem:[#allocation2 + $0x38] sm:$0xff]  ;;  %v217_v34 = vand.u32 127, %v216_v33 }
  0x17   :  { %272 = vmatmul.mubr.msk.f32.vlgmr.msra.gmra.mrb[0].mxu0 %vm44_vm2, %v35_v3  ;;  %v310_v8 = vpack.c.bf16 %v124_v5, %v123_v4  ;;  %v127_v10 = vld [vmem:[#allocation2 + $0x20] sm:$0xff]  ;;  %v319_v15 = vpack.c.bf16 %v130_v14, %v129_v13  ;;  %v132_v17 = vld [vmem:[#allocation2 + $0x48] sm:$0xff]  ;;  %v133_v19 = vld [vmem:[#allocation2 + $0x50] sm:$0xff] }
  0x18   :  { %v316_v12 = vpack.c.bf16 %v128_v11, %v127_v10  ;;  %v131_v16 = vld [vmem:[#allocation2 + $0x40] sm:$0xff]  ;;  %v134_v20 = vld [vmem:[#allocation2 + $0x58] sm:$0xff]  ;;  %v136_v23 = vld [vmem:[#allocation2 + $0x68] sm:$0xff]  ;;  %vm218_vm3 = vcmp.lt.s32.totalorder %v217_v34, 2 }
  0x19   :  { %311 = vmatpush3.bf16.msra.mxu1 %v310_v8  ;;  %v322_v18 = vpack.c.bf16 %v132_v17, %v131_v16  ;;  %v325_v21 = vpack.c.bf16 %v134_v20, %v133_v19  ;;  %v135_v22 = vld [vmem:[#allocation2 + $0x60] sm:$0xff]  ;;  %v137_v25 = vld [vmem:[#allocation2 + $0x70] sm:$0xff]  ;;  %v138_v26 = vld [vmem:[#allocation2 + $0x78] sm:$0xff] }
  0x1a   :  { %312 = vmatprep.subr.bf16.mxu1 %v397_v1  ;;  %v328_v24 = vpack.c.bf16 %v136_v23, %v135_v22  ;;  %v331_v27 = vpack.c.bf16 %v138_v26, %v137_v25  ;;  %v246_v28 = vld [vmem:[%s467_s2] ss:$0 sm:$0xff]  ;;  %s398_s2 = smov [#allocation5]  }
  0x1b   :  { %v249_v35 = vld [vmem:[%s469_s4] ss:$0 sm:$0xff]  ;;  %s237_s12 = sshll.u32 %s398_s2, 4  ;;  %s238_s12 = int_to_ptr.vmem [resolvable:$true] %s237_s12 }
  0x1c   :  { %s366_s4 = scalar_lea.vmem %s238_s12, 128  ;;  %p371_p9 = scmp.lt.s32.totalorder %s238_s12, %s238_s12 }
  0x1d   :  { %314 = vmatpush3.bf16.msra.mxu1 %v313_v9  ;;  %p367_p8 = scmp.ne.s32.totalorder %s238_s12, %s366_s4  ;;  %p372_p10 = scmp.lt.s32.totalorder %s366_s4, %s366_s4 }
  0x1e   :  { %315 = vmatprep.subr.bf16.mxu1 %v397_v1 }
  0x1f   :  { %p373_p11 = por %p372_p10, %p371_p9 }
  0x21   :  { %317 = vmatpush3.bf16.msra.mxu1 %v316_v12  ;;  %p374_p12 = pnand %p373_p11, %p367_p8 }
  0x22   :  { %318 = vmatprep.subr.bf16.mxu1 %v397_v1 }
  0x25   :  { %320 = vmatpush3.bf16.msra.mxu1 %v319_v15 }
  0x26   :  { %321 = vmatprep.subr.bf16.mxu1 %v397_v1 }
  0x29   :  { %323 = vmatpush3.bf16.msra.mxu1 %v322_v18 }
  0x2a   :  { %324 = vmatprep.subr.bf16.mxu1 %v397_v1 }
  0x2d   :  { %326 = vmatpush3.bf16.msra.mxu1 %v325_v21 }
  0x2e   :  { %327 = vmatprep.subr.bf16.mxu1 %v397_v1 }
  0x31   :  { %329 = vmatpush3.bf16.msra.mxu1 %v328_v24 }
  0x32   :  { %330 = vmatprep.subr.bf16.mxu1 %v397_v1 }
  0x35   :  { %332 = vmatpush3.bf16.msra.mxu1 %v331_v27 }
  0xea   :  { %v118_v29 = vpop.f32.mrb[0].mxu0 }
  0xeb   :  { %v119_v30 = vadd.f32 %v246_v28, %v118_v29  ;;  %v273_v31 = vpop.f32.mrb[1].mxu0 }
  0xed   :  { %v122_v32 = vmax.f32 %v119_v30, 0.0 }
  0xef   :  { %307 = vmatmul.mubr.f32.vlgmr.msra.gmra.mrb[0].mxu1 %v122_v32 }
 0x1c2   :  { %v212_v36 = vpop.f32.mrb[0].mxu1 }
 0x1c3   :  { %v213_v37 = vadd.f32 %v249_v35, %v212_v36  ;;  %v308_v38 = vpop.f32.mrb[1].mxu1 }
 0x1c5   :  { %v219_v39 = vsel %vm218_vm3, %v213_v37, -1e+30 }
 0x1c6   :  { %220 = vmax.xlane.f32.xlu0 %v219_v39 }
 0x253   :  { %v221_v40 = vpop.xlane.xlu0 %220 }
 0x254   :  { %v222_v41 = vsub.f32 %v219_v39, %v221_v40 }
 0x256   :  { %v223_v42 = vmul.f32 1.442695, %v222_v41 }
 0x258   :  { %340 = vpow2.f32 %v223_v42 }
 0x262   :  { %v341_v43 = vpop.eup %340 }
 0x263   :  { %v225_v44 = vsel %vm218_vm3, %v341_v43, 0.0 }
 0x264   :  { %226 = vadd.xlane.f32.xlu0 %v225_v44 }
 0x2f1   :  { %v227_v45 = vpop.xlane.xlu0 %226 }
 0x2f2   :  { %342 = vrcp.f32 %v227_v45 }
 0x2fc   :  { %v343_v46 = vpop.eup %342 }
 0x2fd   :  { %v229_v47 = vmul.f32 %v343_v46, %v225_v44 }
 0x2ff   :  { %230 = vst [vmem:[#allocation5] sm:$0xff] %v229_v47 }
 0x300   :  { %377 = shalt.err (!%p374_p12)
}
 0x301   :  { %s378_s15 = scalar_lea.hbm %s470_s5, 128 }
 0x302   :  { %p379_p13 = scmp.ne.s32.totalorder %s470_s5, %s378_s15  ;;  %p382_p0 = scmp.lt.u32.totalorder %s378_s15, %s470_s5 }
 0x304   :  { %p384_p1 = pnand %p382_p0, %p379_p13 }
 0x306   :  { %387 = shalt.err (!%p384_p1)
}
 0x307   :  { %240 = dma.vmem_to_hbm [thread:$0]  %s238_s12, 128, %s470_s5, [#allocation4]  }
 0x308   :  { %390 = dma.done.wait [#allocation4], 128  }
 0x309   :  { %391 = vsyncadd [#allocation4], 4294967168 }
 0x30a   :  { %244 = vsyncpa [#allocation3], 1 }
 0x30b   :  { %245 = vsyncpa [#allocation4], 1 }

</bundles_post_ra>
